<compile_context>
chip_gen: v5e
topology: v5e:2x2
jax: 0.10.0
libtpu: 0.0.40
codegen_flags: <defaults>
</compile_context>

<pallas_src>
import functools

import jax
import jax.numpy as jnp
from jax.experimental import pallas as pl
from jax.experimental.pallas import tpu as pltpu


def _two_loss_kernel(x_ref, t_ref, out_ref,
                     bce_acc, nv_acc, lbl_acc, nl_acc, *, binary_weight):
    pid = pl.program_id(0)

    @pl.when(pid == 0)
    def _():
        bce_acc[...] = jnp.zeros_like(bce_acc)
        nv_acc[...] = jnp.zeros_like(nv_acc)
        lbl_acc[...] = jnp.zeros_like(lbl_acc)
        nl_acc[...] = jnp.zeros_like(nl_acc)

    x = x_ref[...].astype(jnp.float32)                 # (C, T) lane-dense tile
    t = t_ref[...]                                     # (1, T) int32
    C, T = x.shape
    na_idx = C - 1

    valid = t != -100                                  # (1, T)
    valid_f = valid.astype(jnp.float32)

    # ---- binary (NA) loss partials: BCE-with-logits on the last class row ----
    z = x[na_idx:na_idx + 1, :]                        # (1, T) NA logit
    y = (t == na_idx).astype(jnp.float32)              # (1, T) NA label
    bce = jnp.maximum(z, 0.0) - z * y + jnp.log1p(jnp.exp(-jnp.abs(z)))
    bce_acc[...] += jnp.sum(bce * valid_f, axis=1, keepdims=True)   # (1, 1)
    nv_acc[...] += jnp.sum(valid_f, axis=1, keepdims=True)          # (1, 1)

    # ---- label loss partials: CE over first C-1 classes, valid non-NA rows ----
    row = jax.lax.broadcasted_iota(jnp.int32, (C, T), 0)  # class id per sublane
    keep = row < na_idx                                    # exclude NA class
    neg_big = jnp.float32(-1e30)
    xm = jnp.where(keep, x, neg_big)
    m = jnp.max(xm, axis=0, keepdims=True)                 # (1, T)
    e = jnp.exp(xm - m)                                    # NA row underflows to 0
    lse = m + jnp.log(jnp.sum(e, axis=0, keepdims=True))   # (1, T)

    onehot = (row == t) & keep                             # (C, T)
    tgt_logit = jnp.sum(jnp.where(onehot, x, 0.0), axis=0, keepdims=True)  # (1, T)
    tgt_logp = tgt_logit - lse                             # (1, T) - no full logp

    lbl_mask = valid & (t != na_idx)                       # (1, T)
    lbl_f = lbl_mask.astype(jnp.float32)
    lbl_acc[...] += -jnp.sum(tgt_logp * lbl_f, axis=1, keepdims=True)
    nl_acc[...] += jnp.sum(lbl_f, axis=1, keepdims=True)

    # ---- finalize on the last tile only ----
    @pl.when(pid == pl.num_programs(0) - 1)
    def _():
        n_valid = nv_acc[...]
        na_loss = bce_acc[...] / n_valid               # NaN if no valid rows (torch)
        n_lbl = nl_acc[...]
        label_loss = jnp.where(n_lbl > 0.0,
                               lbl_acc[...] / jnp.maximum(n_lbl, 1.0),
                               0.0)
        out_ref[...] = na_loss * jnp.float32(binary_weight) + label_loss


def two_loss(logits, targets, binary_weight=1.0, tile_n=2048):
    """logits: (..., C) float (f32 or bf16); targets: (...) int, -100 = ignore."""
    C = logits.shape[-1]
    x2 = logits.reshape(-1, C)                         # keep native dtype in HBM
    t1 = targets.reshape(-1).astype(jnp.int32)
    N = x2.shape[0]

    # lane-dense layout: classes on sublanes, rows on the 128-lane axis
    xt = x2.T                                          # (C, N)
    tt = t1.reshape(1, N)                              # (1, N)

    # tile size: multiple of 128 lanes, no bigger than the (lane-rounded) N
    n_lanes = pl.cdiv(N, 128) * 128
    tile = min(int(tile_n), n_lanes)
    tile = pl.cdiv(tile, 128) * 128
    n_pad = pl.cdiv(N, tile) * tile
    if n_pad != N:
        xt = jnp.pad(xt, ((0, 0), (0, n_pad - N)))
        tt = jnp.pad(tt, ((0, 0), (0, n_pad - N)), constant_values=-100)

    grid = (n_pad // tile,)
    kernel = functools.partial(_two_loss_kernel, binary_weight=float(binary_weight))

    out = pl.pallas_call(
        kernel,
        out_shape=jax.ShapeDtypeStruct((1, 1), jnp.float32),
        grid_spec=pltpu.PrefetchScalarGridSpec(
            num_scalar_prefetch=0,
            grid=grid,
            in_specs=[
                pl.BlockSpec((C, tile), lambda i: (0, i)),
                pl.BlockSpec((1, tile), lambda i: (0, i)),
            ],
            out_specs=pl.BlockSpec((1, 1), lambda i: (0, 0)),
            scratch_shapes=[pltpu.VMEM((1, 1), jnp.float32),
                            pltpu.VMEM((1, 1), jnp.float32),
                            pltpu.VMEM((1, 1), jnp.float32),
                            pltpu.VMEM((1, 1), jnp.float32)],
        ),
        compiler_params=pltpu.CompilerParams(
            dimension_semantics=("arbitrary",)),
    )(xt, tt)
    return out[0, 0]


def two_loss_ref(logits, targets, binary_weight=1.0):
    """Pure-JAX reference (masked arithmetic, same math as the PyTorch module)."""
    C = logits.shape[-1]
    x = logits.reshape(-1, C).astype(jnp.float32)
    t = targets.reshape(-1).astype(jnp.int32)
    na_idx = C - 1
    valid = t != -100
    y = (t == na_idx).astype(jnp.float32)
    z = x[:, -1]
    bce = jnp.maximum(z, 0.0) - z * y + jnp.log1p(jnp.exp(-jnp.abs(z)))
    na_loss = jnp.sum(jnp.where(valid, bce, 0.0)) / jnp.sum(valid)
    logp = jax.nn.log_softmax(x[:, :-1], axis=1)
    lbl_mask = valid & (t != na_idx)
    tsafe = jnp.clip(t, 0, C - 2)
    tgt_logp = jnp.take_along_axis(logp, tsafe[:, None], axis=1)[:, 0]
    n_lbl = jnp.sum(lbl_mask)
    label_loss = jnp.where(
        n_lbl > 0,
        -jnp.sum(jnp.where(lbl_mask, tgt_logp, 0.0)) / jnp.maximum(n_lbl, 1),
        0.0,
    )
    return na_loss * binary_weight + label_loss


if __name__ == "__main__":
    key = jax.random.PRNGKey(0)
    k1, k2, k3 = jax.random.split(key, 3)

    # small case: single tile
    B, L, C = 2, 8, 8          # batch, seq, num classes (last class = NA)
    logits = jax.random.normal(k1, (B, L, C), dtype=jnp.float32)
    targets = jax.random.randint(k2, (B, L), 0, C, dtype=jnp.int32)
    drop = jax.random.uniform(k3, (B, L)) < 0.2
    targets = jnp.where(drop, jnp.int32(-100), targets)   # ignore-index positions

    loss = two_loss(logits, targets, binary_weight=1.0)
    jax.block_until_ready(loss)
    ref = two_loss_ref(logits, targets, binary_weight=1.0)
    assert jnp.abs(loss - ref) < 1e-4, (loss, ref)

    # multi-tile case: grid > 1 with a padded final tile (forced tile_n=128)
    k4, k5, k6 = jax.random.split(jax.random.PRNGKey(1), 3)
    B2, L2 = 4, 75            # N = 300 rows -> 3 tiles of 128 lanes, 84 padded rows
    logits2 = jax.random.normal(k4, (B2, L2, C), dtype=jnp.float32)
    targets2 = jax.random.randint(k5, (B2, L2), 0, C, dtype=jnp.int32)
    drop2 = jax.random.uniform(k6, (B2, L2)) < 0.3
    targets2 = jnp.where(drop2, jnp.int32(-100), targets2)

    loss2 = two_loss(logits2, targets2, binary_weight=0.5, tile_n=128)
    jax.block_until_ready(loss2)
    ref2 = two_loss_ref(logits2, targets2, binary_weight=0.5)
    assert jnp.abs(loss2 - ref2) < 1e-4, (loss2, ref2)

    print("KERNEL_OK")
</pallas_src>

<mosaic_0001>
module attributes {stable_mosaic.version = 11 : i64} {
  func.func @_two_loss_kernel(%arg0: i32, %arg1: memref<8x128xf32, #tpu.memory_space<vmem>>, %arg2: memref<1x128xi32, #tpu.memory_space<vmem>>, %arg3: memref<1x1xf32, #tpu.memory_space<vmem>>, %arg4: memref<1x1xf32, #tpu.memory_space<vmem>>, %arg5: memref<1x1xf32, #tpu.memory_space<vmem>>, %arg6: memref<1x1xf32, #tpu.memory_space<vmem>>, %arg7: memref<1x1xf32, #tpu.memory_space<vmem>>) attributes {dimension_semantics = [#tpu.dimension_semantics<arbitrary>], iteration_bounds = array<i64: 1>, scalar_prefetch = 0 : i64, scratch_operands = 4 : i64, tpu.core_type = #tpu.core_type<tc>, window_params = [{transform_indices = @transform_0, window_bounds = array<i64: 8, 128>}, {transform_indices = @transform_1, window_bounds = array<i64: 1, 128>}, {pipeline_mode = #tpu.pipeline_mode<synchronous>, transform_indices = @transform_2, window_bounds = array<i64: 1, 1>}]} {
    %c0_i32 = arith.constant 0 : i32
    %0 = arith.cmpi eq, %arg0, %c0_i32 : i32
    %1 = arith.extui %0 : i1 to i32
    %c0_i32_0 = arith.constant 0 : i32
    %2 = arith.cmpi ne, %1, %c0_i32_0 : i32
    scf.if %2 {
      %cst_35 = arith.constant 0.000000e+00 : f32
      %78 = vector.broadcast %cst_35 : f32 to vector<1x1xf32>
      %c0_36 = arith.constant 0 : index
      %c0_37 = arith.constant 0 : index
      %79 = vector.load %arg4[%c0_36, %c0_37] : memref<1x1xf32, #tpu.memory_space<vmem>>, vector<1x1xf32>
      tpu.vector_store %arg4[%c0_36, %c0_37], %78 {strides = array<i32>} : memref<1x1xf32, #tpu.memory_space<vmem>>, vector<1x1xf32>,
      %cst_38 = arith.constant 0.000000e+00 : f32
      %80 = vector.broadcast %cst_38 : f32 to vector<1x1xf32>
      %c0_39 = arith.constant 0 : index
      %c0_40 = arith.constant 0 : index
      %81 = vector.load %arg5[%c0_39, %c0_40] : memref<1x1xf32, #tpu.memory_space<vmem>>, vector<1x1xf32>
      tpu.vector_store %arg5[%c0_39, %c0_40], %80 {strides = array<i32>} : memref<1x1xf32, #tpu.memory_space<vmem>>, vector<1x1xf32>,
      %cst_41 = arith.constant 0.000000e+00 : f32
      %82 = vector.broadcast %cst_41 : f32 to vector<1x1xf32>
      %c0_42 = arith.constant 0 : index
      %c0_43 = arith.constant 0 : index
      %83 = vector.load %arg6[%c0_42, %c0_43] : memref<1x1xf32, #tpu.memory_space<vmem>>, vector<1x1xf32>
      tpu.vector_store %arg6[%c0_42, %c0_43], %82 {strides = array<i32>} : memref<1x1xf32, #tpu.memory_space<vmem>>, vector<1x1xf32>,
      %cst_44 = arith.constant 0.000000e+00 : f32
      %84 = vector.broadcast %cst_44 : f32 to vector<1x1xf32>
      %c0_45 = arith.constant 0 : index
      %c0_46 = arith.constant 0 : index
      %85 = vector.load %arg7[%c0_45, %c0_46] : memref<1x1xf32, #tpu.memory_space<vmem>>, vector<1x1xf32>
      tpu.vector_store %arg7[%c0_45, %c0_46], %84 {strides = array<i32>} : memref<1x1xf32, #tpu.memory_space<vmem>>, vector<1x1xf32>,
    } else {
    }
    %c0 = arith.constant 0 : index
    %c0_1 = arith.constant 0 : index
    %3 = vector.load %arg1[%c0, %c0_1] : memref<8x128xf32, #tpu.memory_space<vmem>>, vector<8x128xf32>
    %c0_2 = arith.constant 0 : index
    %c0_3 = arith.constant 0 : index
    %4 = vector.load %arg2[%c0_2, %c0_3] : memref<1x128xi32, #tpu.memory_space<vmem>>, vector<1x128xi32>
    %c-100_i32 = arith.constant -100 : i32
    %5 = vector.broadcast %c-100_i32 : i32 to vector<1x128xi32>
    %6 = arith.cmpi ne, %4, %5 : vector<1x128xi32>
    %7 = arith.extui %6 : vector<1x128xi1> to vector<1x128xi32>
    %8 = arith.sitofp %7 : vector<1x128xi32> to vector<1x128xf32>
    %9 = vector.extract_strided_slice %3 {offsets = [7, 0], sizes = [1, 128], strides = [1, 1]} : vector<8x128xf32> to vector<1x128xf32>
    %c7_i32 = arith.constant 7 : i32
    %10 = vector.broadcast %c7_i32 : i32 to vector<1x128xi32>
    %11 = arith.cmpi eq, %4, %10 : vector<1x128xi32>
    %12 = arith.extui %11 : vector<1x128xi1> to vector<1x128xi32>
    %13 = arith.sitofp %12 : vector<1x128xi32> to vector<1x128xf32>
    %cst = arith.constant 0.000000e+00 : f32
    %14 = vector.broadcast %cst : f32 to vector<1x128xf32>
    %15 = arith.maximumf %9, %14 : vector<1x128xf32>
    %16 = arith.mulf %9, %13 : vector<1x128xf32>
    %17 = arith.subf %15, %16 : vector<1x128xf32>
    %18 = math.absf %9 : vector<1x128xf32>
    %cst_4 = arith.constant 0.000000e+00 : f32
    %19 = vector.broadcast %cst_4 : f32 to vector<1x128xf32>
    %20 = arith.subf %19, %18 : vector<1x128xf32>
    %21 = math.exp %20 : vector<1x128xf32>
    %22 = math.log1p %21 : vector<1x128xf32>
    %23 = arith.addf %17, %22 : vector<1x128xf32>
    %c0_5 = arith.constant 0 : index
    %c0_6 = arith.constant 0 : index
    %24 = vector.load %arg4[%c0_5, %c0_6] : memref<1x1xf32, #tpu.memory_space<vmem>>, vector<1x1xf32>
    %25 = arith.mulf %23, %8 : vector<1x128xf32>
    %cst_7 = arith.constant dense<0.000000e+00> : vector<1xf32>
    %26 = vector.multi_reduction <add>, %25, %cst_7 [1] : vector<1x128xf32> to vector<1xf32>
    %27 = vector.shape_cast %26 : vector<1xf32> to vector<1x1xf32>
    %28 = arith.addf %24, %27 : vector<1x1xf32>
    %c0_8 = arith.constant 0 : index
    %c0_9 = arith.constant 0 : index
    %29 = vector.load %arg4[%c0_8, %c0_9] : memref<1x1xf32, #tpu.memory_space<vmem>>, vector<1x1xf32>
    tpu.vector_store %arg4[%c0_8, %c0_9], %28 {strides = array<i32>} : memref<1x1xf32, #tpu.memory_space<vmem>>, vector<1x1xf32>,
    %c0_10 = arith.constant 0 : index
    %c0_11 = arith.constant 0 : index
    %30 = vector.load %arg5[%c0_10, %c0_11] : memref<1x1xf32, #tpu.memory_space<vmem>>, vector<1x1xf32>
    %cst_12 = arith.constant dense<0.000000e+00> : vector<1xf32>
    %31 = vector.multi_reduction <add>, %8, %cst_12 [1] : vector<1x128xf32> to vector<1xf32>
    %32 = vector.shape_cast %31 : vector<1xf32> to vector<1x1xf32>
    %33 = arith.addf %30, %32 : vector<1x1xf32>
    %c0_13 = arith.constant 0 : index
    %c0_14 = arith.constant 0 : index
    %34 = vector.load %arg5[%c0_13, %c0_14] : memref<1x1xf32, #tpu.memory_space<vmem>>, vector<1x1xf32>
    tpu.vector_store %arg5[%c0_13, %c0_14], %33 {strides = array<i32>} : memref<1x1xf32, #tpu.memory_space<vmem>>, vector<1x1xf32>,
    %35 = tpu.iota {dimensions = array<i32: 0>} : vector<8x128xi32>
    %c7_i32_15 = arith.constant 7 : i32
    %36 = vector.broadcast %c7_i32_15 : i32 to vector<8x128xi32>
    %37 = arith.cmpi slt, %35, %36 : vector<8x128xi32>
    %cst_16 = arith.constant -1.000000e+30 : f32
    %38 = vector.broadcast %cst_16 : f32 to vector<8x128xf32>
    %39 = arith.select %37, %3, %38 : vector<8x128xi1>, vector<8x128xf32>
    %cst_17 = arith.constant dense<0xFF800000> : vector<128xf32>
    %40 = vector.multi_reduction <maximumf>, %39, %cst_17 [0] : vector<8x128xf32> to vector<128xf32>
    %41 = vector.shape_cast %40 : vector<128xf32> to vector<1x128xf32>
    %42 = vector.broadcast %41 : vector<1x128xf32> to vector<8x128xf32>
    %43 = arith.subf %39, %42 : vector<8x128xf32>
    %44 = math.exp %43 : vector<8x128xf32>
    %cst_18 = arith.constant dense<0.000000e+00> : vector<128xf32>
    %45 = vector.multi_reduction <add>, %44, %cst_18 [0] : vector<8x128xf32> to vector<128xf32>
    %46 = vector.shape_cast %45 : vector<128xf32> to vector<1x128xf32>
    %47 = math.log %46 : vector<1x128xf32>
    %48 = arith.addf %41, %47 : vector<1x128xf32>
    %49 = vector.broadcast %4 : vector<1x128xi32> to vector<8x128xi32>
    %50 = arith.cmpi eq, %35, %49 : vector<8x128xi32>
    %51 = arith.andi %50, %37 : vector<8x128xi1>
    %cst_19 = arith.constant 0.000000e+00 : f32
    %52 = vector.broadcast %cst_19 : f32 to vector<8x128xf32>
    %53 = arith.select %51, %3, %52 : vector<8x128xi1>, vector<8x128xf32>
    %cst_20 = arith.constant dense<0.000000e+00> : vector<128xf32>
    %54 = vector.multi_reduction <add>, %53, %cst_20 [0] : vector<8x128xf32> to vector<128xf32>
    %55 = vector.shape_cast %54 : vector<128xf32> to vector<1x128xf32>
    %56 = arith.subf %55, %48 : vector<1x128xf32>
    %c7_i32_21 = arith.constant 7 : i32
    %57 = vector.broadcast %c7_i32_21 : i32 to vector<1x128xi32>
    %58 = arith.cmpi ne, %4, %57 : vector<1x128xi32>
    %59 = arith.andi %6, %58 : vector<1x128xi1>
    %60 = arith.extui %59 : vector<1x128xi1> to vector<1x128xi32>
    %61 = arith.sitofp %60 : vector<1x128xi32> to vector<1x128xf32>
    %c0_22 = arith.constant 0 : index
    %c0_23 = arith.constant 0 : index
    %62 = vector.load %arg6[%c0_22, %c0_23] : memref<1x1xf32, #tpu.memory_space<vmem>>, vector<1x1xf32>
    %63 = arith.mulf %56, %61 : vector<1x128xf32>
    %cst_24 = arith.constant dense<0.000000e+00> : vector<1xf32>
    %64 = vector.multi_reduction <add>, %63, %cst_24 [1] : vector<1x128xf32> to vector<1xf32>
    %65 = vector.shape_cast %64 : vector<1xf32> to vector<1x1xf32>
    %cst_25 = arith.constant 0.000000e+00 : f32
    %66 = vector.broadcast %cst_25 : f32 to vector<1x1xf32>
    %67 = arith.subf %66, %65 : vector<1x1xf32>
    %68 = arith.addf %62, %67 : vector<1x1xf32>
    %c0_26 = arith.constant 0 : index
    %c0_27 = arith.constant 0 : index
    %69 = vector.load %arg6[%c0_26, %c0_27] : memref<1x1xf32, #tpu.memory_space<vmem>>, vector<1x1xf32>
    tpu.vector_store %arg6[%c0_26, %c0_27], %68 {strides = array<i32>} : memref<1x1xf32, #tpu.memory_space<vmem>>, vector<1x1xf32>,
    %c0_28 = arith.constant 0 : index
    %c0_29 = arith.constant 0 : index
    %70 = vector.load %arg7[%c0_28, %c0_29] : memref<1x1xf32, #tpu.memory_space<vmem>>, vector<1x1xf32>
    %cst_30 = arith.constant dense<0.000000e+00> : vector<1xf32>
    %71 = vector.multi_reduction <add>, %61, %cst_30 [1] : vector<1x128xf32> to vector<1xf32>
    %72 = vector.shape_cast %71 : vector<1xf32> to vector<1x1xf32>
    %73 = arith.addf %70, %72 : vector<1x1xf32>
    %c0_31 = arith.constant 0 : index
    %c0_32 = arith.constant 0 : index
    %74 = vector.load %arg7[%c0_31, %c0_32] : memref<1x1xf32, #tpu.memory_space<vmem>>, vector<1x1xf32>
    tpu.vector_store %arg7[%c0_31, %c0_32], %73 {strides = array<i32>} : memref<1x1xf32, #tpu.memory_space<vmem>>, vector<1x1xf32>,
    %c0_i32_33 = arith.constant 0 : i32
    %75 = arith.cmpi eq, %arg0, %c0_i32_33 : i32
    %76 = arith.extui %75 : i1 to i32
    %c0_i32_34 = arith.constant 0 : i32
    %77 = arith.cmpi ne, %76, %c0_i32_34 : i32
    scf.if %77 {
      %c0_35 = arith.constant 0 : index
      %c0_36 = arith.constant 0 : index
      %78 = vector.load %arg5[%c0_35, %c0_36] : memref<1x1xf32, #tpu.memory_space<vmem>>, vector<1x1xf32>
      %c0_37 = arith.constant 0 : index
      %c0_38 = arith.constant 0 : index
      %79 = vector.load %arg4[%c0_37, %c0_38] : memref<1x1xf32, #tpu.memory_space<vmem>>, vector<1x1xf32>
      %80 = arith.divf %79, %78 : vector<1x1xf32>
      %c0_39 = arith.constant 0 : index
      %c0_40 = arith.constant 0 : index
      %81 = vector.load %arg7[%c0_39, %c0_40] : memref<1x1xf32, #tpu.memory_space<vmem>>, vector<1x1xf32>
      %cst_41 = arith.constant 0.000000e+00 : f32
      %82 = vector.broadcast %cst_41 : f32 to vector<1x1xf32>
      %83 = arith.cmpf ogt, %81, %82 : vector<1x1xf32>
      %c0_42 = arith.constant 0 : index
      %c0_43 = arith.constant 0 : index
      %84 = vector.load %arg6[%c0_42, %c0_43] : memref<1x1xf32, #tpu.memory_space<vmem>>, vector<1x1xf32>
      %cst_44 = arith.constant 1.000000e+00 : f32
      %85 = vector.broadcast %cst_44 : f32 to vector<1x1xf32>
      %86 = arith.maximumf %81, %85 : vector<1x1xf32>
      %87 = arith.divf %84, %86 : vector<1x1xf32>
      %cst_45 = arith.constant 0.000000e+00 : f32
      %88 = vector.broadcast %cst_45 : f32 to vector<1x1xf32>
      %89 = arith.select %83, %87, %88 : vector<1x1xi1>, vector<1x1xf32>
      %cst_46 = arith.constant 1.000000e+00 : f32
      %90 = vector.broadcast %cst_46 : f32 to vector<1x1xf32>
      %91 = arith.mulf %80, %90 : vector<1x1xf32>
      %92 = arith.addf %91, %89 : vector<1x1xf32>
      %c0_47 = arith.constant 0 : index
      %c0_48 = arith.constant 0 : index
      %93 = vector.load %arg3[%c0_47, %c0_48] : memref<1x1xf32, #tpu.memory_space<vmem>>, vector<1x1xf32>
      tpu.vector_store %arg3[%c0_47, %c0_48], %92 {strides = array<i32>} : memref<1x1xf32, #tpu.memory_space<vmem>>, vector<1x1xf32>,
    } else {
    }
    return
  }
  func.func @transform_0(%arg0: i32) -> (i32, i32) {
    %c0_i32 = arith.constant 0 : i32
    %c0_i32_0 = arith.constant 0 : i32
    return %c0_i32, %arg0 : i32, i32
  }
  func.func @transform_1(%arg0: i32) -> (i32, i32) {
    %c0_i32 = arith.constant 0 : i32
    %c0_i32_0 = arith.constant 0 : i32
    return %c0_i32, %arg0 : i32, i32
  }
  func.func @transform_2(%arg0: i32) -> (i32, i32) {
    %c0_i32 = arith.constant 0 : i32
    %c0_i32_0 = arith.constant 0 : i32
    %c0_i32_1 = arith.constant 0 : i32
    return %c0_i32, %c0_i32_0 : i32, i32
  }
}

</mosaic_0001>

<bundles_post_ra>
// kernel: tpu_custom_call.1
= control target key start
LH: loop header
LB: loop body
LE: loop exit
PB: predicated region body
PF: predicated region fallthrough
CT: control target
= control target key end

     0   :  { %7 = vsyncpa [#allocation7], 0  ;;  %s365_s0 = inlined_call_operand.hbm [shape: f32[8,128], index: 0, kind: input, shape index: {}]   ;;  %s366_s1 = inlined_call_operand.hbm [shape: s32[1,128], index: 1, kind: input, shape index: {}]   ;;  %s367_s2 = inlined_call_operand.hbm [shape: f32[1,1], index: 2, kind: output, shape index: {}]  }
   0x1   :  { %8 = vsyncpa [#allocation10], 0 }
   0x2   :  { %9 = vsyncpa [#allocation8], 0  ;;  %s15_s11 = sshll.u32 %s365_s0, 4  ;;  %s308_s12 = smov [#allocation6]   ;;  %s16_s11 = int_to_ptr.hbm [resolvable:$true] %s15_s11 }
   0x3   :  { %s17_s13 = sshll.u32 %s308_s12, 4  ;;  %s26_s16 = sshll.u32 %s366_s1, 4  ;;  %s18_s13 = int_to_ptr.vmem [resolvable:$true] %s17_s13  ;;  %s27_s16 = int_to_ptr.hbm [resolvable:$true] %s26_s16 }
   0x4   :  { %20 = dma.hbm_to_vmem [thread:$0]  %s16_s11, 128, %s18_s13, [#allocation7]  }
   0x5   :  { %s309_s17 = smov [#allocation9]  }
   0x6   :  { %s28_s18 = sshll.u32 %s309_s17, 4  ;;  %s29_s18 = int_to_ptr.vmem [resolvable:$true] %s28_s18 }
   0x7   :  { %31 = dma.hbm_to_vmem [thread:$0]  %s27_s16, 16, %s29_s18, [#allocation10]  }
   0x8   :  { %302 = dma.done.wait [#allocation7], 128  }
   0x9   :  { %303 = vsyncadd [#allocation7], 4294967168 }
   0xa   :  { %304 = dma.done.wait [#allocation10], 16  }
   0xb   :  { %305 = vsyncadd [#allocation10], 4294967280  ;;  %v99_v0 = vlaneseq  ;;  %v50_v2 = vld [vmem:[#allocation9] sm:$0x1]  ;;  %v333_v3 = vld [vmem:[#allocation6] sm:$0xff]  ;;  %vm93_vm2 = vcmask 1040384  }
   0xc   :  { %vm51_vm1 = vcmp.ne.s32.totalorder %v50_v2, 4294967196  ;;  %vm132_vm3 = vcmp.ne.s32.totalorder %v50_v2, 7  ;;  %v310_v6 = vmov 0.0   ;;  %v63_v13 = vand.u32 2147483647, %v333_v3  ;;  %s311_s0 = smov [#allocation11]  }
   0xd   :  { %v100_v1 = vshrl.u32 %v99_v0, 7  ;;  %vm133_vm4 = vmand %vm51_vm1, %vm132_vm3  ;;  %v341_v11 = vsel %vm51_vm1, 1.0, %v310_v6  ;;  %v217_v16 = vld [vmem:[#allocation9] ss:$0 sm:$0xff]  ;;  %vm44_vm7 = vcmask 0   ;;  %vm54_vm8 = vcmp.eq.s32.totalorder %v50_v2, 7 }
   0xe   :  { %v337_v7 = vsel %vm133_vm4, 1.0, %v310_v6  ;;  %v94_v14 = vsel %vm93_vm2, %v341_v11, 0.0  ;;  %v64_v18 = vsub.f32 0.0, %v63_v13  ;;  %48 = vst.msk [vmem:[#allocation5] sm:$0x1] %vm44_vm7, %v310_v6  ;;  %v211_v35 = vsel %vm54_vm8, 1.0, %v310_v6 }
   0xf   :  { %vm101_vm0 = vcmp.lt.s32.totalorder %v100_v1, 7  ;;  %v145_v8 = vsel %vm93_vm2, %v337_v7, 0.0  ;;  %vm122_vm5 = vcmp.eq.s32.totalorder %v100_v1, %v217_v16  ;;  %45 = vst.msk [vmem:[#allocation2] sm:$0x1] %vm44_vm7, %v310_v6  ;;  %v59_v38 = vperm.slane %v211_v35, 0  ;;  %s197_s1 = sshll.u32 %s311_s0, 4  ;;  %s198_s1 = int_to_ptr.vmem [resolvable:$true] %s197_s1 }
  0x10   :  { %v102_v4 = vsel %vm101_vm0, %v333_v3, -1e+30  ;;  %146 = vadd.xlane.f32.xlu0 %v145_v8  ;;  %v65_v21 = vmul.f32 1.442695, %v64_v18  ;;  %vm123_vm6 = vmand %vm122_vm5, %vm101_vm0  ;;  %46 = vst.msk [vmem:[#allocation3] sm:$0x1] %vm44_vm7, %v310_v6 }
  0x11   :  { %v103_v5 = vrot.slane %v102_v4, 4  ;;  %v124_v22 = vsel %vm123_vm6, %v333_v3, 0.0  ;;  %47 = vst.msk [vmem:[#allocation4] sm:$0x1] %vm44_vm7, %v310_v6  ;;  %v57_v43 = vmax.f32 %v333_v3, 0.0  ;;  %v61_v44 = vmul.f32 %v59_v38, %v333_v3  ;;  %s199_s21 = sshll.u32 %s367_s2, 4  ;;  %s200_s21 = int_to_ptr.hbm [resolvable:$true] %s199_s21 }
  0x12   :  { %v125_v24 = vrot.slane %v124_v22, 4  ;;  %v79_v54 = vperm.slane %v341_v11, 0  ;;  %vm82_vm10 = vcmask 1047559  }
  0x13   :  { %v104_v9 = vmax.f32 %v102_v4, %v103_v5  ;;  %v62_v51 = vsub.f32 %v57_v43, %v61_v44 }
  0x14   :  { %v126_v28 = vadd.f32 %v125_v24, %v124_v22 }
  0x15   :  { %v105_v10 = vrot.slane %v104_v9, 2  ;;  %v144_v60 = vld [vmem:[#allocation5] sm:$0x1] }
  0x16   :  { %v127_v32 = vrot.slane %v126_v28, 2 }
  0x17   :  { %v106_v12 = vmax.f32 %v104_v9, %v105_v10  ;;  %v92_v63 = vld [vmem:[#allocation3] sm:$0x1] }
  0x18   :  { %95 = vadd.xlane.f32.xlu0 %v94_v14  ;;  %v128_v37 = vadd.f32 %v127_v32, %v126_v28  ;;  %v136_v9 = vld [vmem:[#allocation4] sm:$0x1] }
  0x19   :  { %v107_v15 = vrot.slane %v106_v12, 1 }
  0x1a   :  { %v129_v41 = vrot.slane %v128_v37, 1 }
  0x1b   :  { %v108_v17 = vmax.f32 %v106_v12, %v107_v15 }
  0x1c   :  { %v130_v49 = vadd.f32 %v129_v41, %v128_v37 }
  0x1d   :  { %v109_v19 = vsub.f32 %v102_v4, %v108_v17 }
  0x1f   :  { %v110_v20 = vmul.f32 1.442695, %v109_v19 }
  0x21   :  { %218 = vpow2.f32 %v110_v20 }
  0x22   :  { %220 = vpow2.f32 %v65_v21 }
  0x27   :  { %v219_v23 = vpop.eup %218 }
  0x28   :  { %v112_v25 = vrot.slane %v219_v23, 4  ;;  %v221_v26 = vpop.eup %220 }
  0x29   :  { %v67_v30 = vadd.f32 1.0, %v221_v26  ;;  %v70_v36 = vmul.f32 -0.5, %v221_v26  ;;  %v73_v42 = vand.u32 2147483647, %v221_v26 }
  0x2a   :  { %v113_v27 = vadd.f32 %v219_v23, %v112_v25 }
  0x2b   :  { %222 = vlog2.f32 %v67_v30  ;;  %v71_v39 = vadd.f32 1.0, %v70_v36  ;;  %vm74_vm9 = vcmp.lt.f32.partialorder %v73_v42, 0.0004427343 }
  0x2c   :  { %v114_v29 = vrot.slane %v113_v27, 2 }
  0x2d   :  { %v72_v47 = vmul.f32 %v221_v26, %v71_v39 }
  0x2e   :  { %v115_v31 = vadd.f32 %v114_v29, %v113_v27 }
  0x30   :  { %v116_v33 = vrot.slane %v115_v31, 1 }
  0x31   :  { %v223_v40 = vpop.eup %222 }
  0x32   :  { %v117_v34 = vadd.f32 %v116_v33, %v115_v31  ;;  %v69_v46 = vmul.f32 0.6931472, %v223_v40 }
  0x34   :  { %224 = vlog2.f32 %v117_v34  ;;  %v75_v52 = vsel %vm74_vm9, %v72_v47, %v69_v46 }
  0x35   :  { %v76_v56 = vadd.f32 %v75_v52, %v62_v51 }
  0x37   :  { %v81_v58 = vmul.f32 %v79_v54, %v76_v56 }
  0x39   :  { %v83_v59 = vsel %vm82_vm10, %v81_v58, 0.0 }
  0x3a   :  { %v225_v45 = vpop.eup %224 }
  0x3b   :  { %v119_v48 = vmul.f32 0.6931472, %v225_v45 }
  0x3d   :  { %v120_v50 = vadd.f32 %v119_v48, %v108_v17  ;;  %v77_v17 = vld [vmem:[#allocation2] sm:$0x1] }
  0x3f   :  { %v131_v53 = vsub.f32 %v130_v49, %v120_v50 }
  0x41   :  { %v137_v55 = vmul.f32 %v337_v7, %v131_v53 }
  0x43   :  { %v138_v57 = vsel %vm93_vm2, %v137_v55, 0.0 }
  0x44   :  { %139 = vadd.xlane.f32.xlu1 %v138_v57 }
  0x4c   :  { %84 = vadd.xlane.f32.xlu1 %v83_v59 }
  0x83   :  { %v147_v61 = vpop.xlane.xlu0 %146 }
  0x84   :  { %v148_v62 = vadd.f32 %v147_v61, %v144_v60 }
  0x86   :  { %149 = vst.msk [vmem:[#allocation5] sm:$0x1] %vm44_vm7, %v148_v62 }
  0x8b   :  { %v96_v0 = vpop.xlane.xlu0 %95 }
  0x8c   :  { %v97_v1 = vadd.f32 %v96_v0, %v92_v63 }
  0x8d   :  { %v170_v2 = vld [vmem:[#allocation5] sm:$0x1] }
  0x8e   :  { %98 = vst.msk [vmem:[#allocation3] sm:$0x1] %vm44_vm7, %v97_v1  ;;  %v173_v3 = vmax.f32 %v170_v2, 1.0  ;;  %vm171_vm3 = vcmp.gt.f32.partialorder %v170_v2, 0.0 }
  0x90   :  { %226 = vrcp.f32 %v173_v3  ;;  %vm179_vm11 = vweird.f32 %v173_v3  ;;  %v185_v20 = vand.u32 2147483648, %v173_v3  ;;  %v183_v22 = vand.u32 2147483647, %v173_v3 }
  0x92   :  { %v186_v27 = vor.u32 1.1754944e-38, %v185_v20  ;;  %vm184_vm1 = vcmp.eq.f32.partialorder %v183_v22, 8.507059e+37 }
  0x95   :  { %v153_v4 = vld [vmem:[#allocation3] sm:$0x1] }
  0x96   :  { %228 = vrcp.f32 %v153_v4  ;;  %v227_v5 = vpop.eup %226  ;;  %vm160_vm13 = vweird.f32 %v153_v4  ;;  %v166_v24 = vand.u32 2147483648, %v153_v4  ;;  %v164_v26 = vand.u32 2147483647, %v153_v4 }
  0x97   :  { %v175_v7 = vmul.f32 %v227_v5, %v173_v3  ;;  %vm180_vm12 = vweird.f32 %v227_v5 }
  0x98   :  { %vm181_vm15 = vmor %vm179_vm11, %vm180_vm12  ;;  %v167_v30 = vor.u32 1.1754944e-38, %v166_v24  ;;  %vm165_vm2 = vcmp.eq.f32.partialorder %v164_v26, 8.507059e+37 }
  0x99   :  { %v176_v12 = vsub.f32 1.0, %v175_v7 }
  0x9b   :  { %v177_v15 = vmul.f32 %v227_v5, %v176_v12 }
  0x9c   :  { %v229_v6 = vpop.eup %228 }
  0x9d   :  { %v156_v11 = vmul.f32 %v229_v6, %v153_v4  ;;  %v178_v21 = vadd.f32 %v227_v5, %v177_v15  ;;  %vm161_vm14 = vweird.f32 %v229_v6 }
  0x9e   :  { %vm162_vm0 = vmor %vm160_vm13, %vm161_vm14 }
  0x9f   :  { %v157_v14 = vsub.f32 1.0, %v156_v11  ;;  %v182_v28 = vsel %vm181_vm15, %v227_v5, %v178_v21 }
  0xa0   :  { %v187_v32 = vsel %vm184_vm1, %v186_v27, %v182_v28 }
  0xa1   :  { %v158_v19 = vmul.f32 %v229_v6, %v157_v14 }
  0xa3   :  { %v159_v25 = vadd.f32 %v229_v6, %v158_v19 }
  0xa5   :  { %v163_v31 = vsel %vm162_vm0, %v229_v6, %v159_v25 }
  0xa6   :  { %v168_v35 = vsel %vm165_vm2, %v167_v30, %v163_v31 }
  0xb7   :  { %v140_v8 = vpop.xlane.xlu1 %139 }
  0xb8   :  { %v141_v10 = vsub.f32 0.0, %v140_v8 }
  0xba   :  { %v142_v13 = vadd.f32 %v141_v10, %v136_v9 }
  0xbc   :  { %143 = vst.msk [vmem:[#allocation4] sm:$0x1] %vm44_vm7, %v142_v13 }
  0xbf   :  { %v85_v16 = vpop.xlane.xlu1 %84 }
  0xc0   :  { %v87_v18 = vperm.slane %v85_v16, 7 }
  0xc2   :  { %v89_v23 = vadd.f32 %v87_v18, %v77_v17 }
  0xc3   :  { %v172_v29 = vld [vmem:[#allocation4] sm:$0x1] }
  0xc4   :  { %91 = vst.msk [vmem:[#allocation2] sm:$0x1] %vm44_vm7, %v89_v23  ;;  %v188_v33 = vmul.f32 %v187_v32, %v172_v29 }
  0xc6   :  { %v189_v37 = vsel %vm171_vm3, %v188_v33, 0.0 }
  0xcb   :  { %v154_v34 = vld [vmem:[#allocation2] sm:$0x1] }
  0xcc   :  { %v169_v36 = vmul.f32 %v168_v35, %v154_v34 }
  0xce   :  { %v190_v38 = vadd.f32 %v189_v37, %v169_v36 }
  0xd0   :  { %191 = vst.msk [vmem:[#allocation11] sm:$0x1] %vm44_vm7, %v190_v38 }
  0xd1   :  { %202 = dma.vmem_to_hbm [thread:$0]  %s198_s1, 16, %s200_s21, [#allocation8]  }
  0xd2   :  { %306 = dma.done.wait [#allocation8], 16  }
  0xd3   :  { %307 = vsyncadd [#allocation8], 4294967280 }
  0xd4   :  { %207 = vsyncpa [#allocation7], 1 }
  0xd5   :  { %208 = vsyncpa [#allocation10], 1 }
  0xd6   :  { %209 = vsyncpa [#allocation8], 1 }

</bundles_post_ra>
